<compile_context>
chip_gen: v7x
topology: tpu7x:2x2x1
jax: 0.10.0
libtpu: 0.0.40
codegen_flags: <defaults>
</compile_context>

<pallas_src>
import functools

import numpy as np
import jax
import jax.numpy as jnp
from jax import lax
from jax.experimental import pallas as pl
from jax.experimental.pallas import tpu as pltpu

_EPS = 1e-5


# ----------------------------------------------------------------------------
# Glue: pooling matrix reproducing PSPModule (AdaptiveAvgPool3d + flatten + cat)
# ----------------------------------------------------------------------------
def adaptive_pool_matrix(h, w, d, sizes):
    """Rows implement AdaptiveAvgPool3d((s,s,s)).view(-1) concatenated over sizes."""
    def bins(dim, s):
        return [(int(np.floor(i * dim / s)), int(np.ceil((i + 1) * dim / s)))
                for i in range(s)]
    rows = []
    for s in sizes:
        bh, bw, bd = bins(h, s), bins(w, s), bins(d, s)
        for (hs, he) in bh:
            for (ws, we) in bw:
                for (ds, de) in bd:
                    m = np.zeros((h, w, d), dtype=np.float32)
                    m[hs:he, ws:we, ds:de] = 1.0 / float(
                        (he - hs) * (we - ws) * (de - ds))
                    rows.append(m.reshape(-1))
    return np.stack(rows, axis=0).astype(np.float32)  # (S, N)


# ----------------------------------------------------------------------------
# Pallas kernels (all operate channels-first on (C, tile_n) blocks)
# ----------------------------------------------------------------------------
def _key_stats_kernel(x_ref, wk_ref, bk_ref, ksum_ref, ksq_ref):
    # Pass 1: GroupNorm statistics of the raw key/query conv (no P traffic here).
    @pl.when(pl.program_id(1) == 0)
    def _():
        ksum_ref[...] = jnp.zeros_like(ksum_ref)
        ksq_ref[...] = jnp.zeros_like(ksq_ref)

    xb = x_ref[0]                                                    # (C, tn) bf16
    kq = jnp.dot(wk_ref[...], xb,
                 preferred_element_type=jnp.float32) + bk_ref[...]   # (Ck, tn) f32
    ksum_ref[0] += jnp.sum(kq, axis=1, keepdims=True)                # XLU lane reduce
    ksq_ref[0] += jnp.sum(kq * kq, axis=1, keepdims=True)


def _pool_kernel(x_ref, p_ref, wkb_ref, bkb_ref, wv_ref, bv_ref, kp_ref, vp_ref):
    # Pass 2: pooled GroupNorm'd key AND pooled value -> P is streamed only once.
    @pl.when(pl.program_id(1) == 0)
    def _():
        kp_ref[...] = jnp.zeros_like(kp_ref)
        vp_ref[...] = jnp.zeros_like(vp_ref)

    xb = x_ref[0]                                                    # (C, tn) bf16
    pb = p_ref[...]                                                  # (S8, tn) bf16

    kq = jnp.dot(wkb_ref[0], xb,
                 preferred_element_type=jnp.float32) + bkb_ref[0]    # key GN folded
    kq = jnp.maximum(kq, 0.0).astype(jnp.bfloat16)                   # (Ck, tn)
    kp_ref[0] += lax.dot_general(kq, pb, (((1,), (1,)), ((), ())),
                                 preferred_element_type=jnp.float32)  # (Ck, S8)

    v = (jnp.dot(wv_ref[...], xb, preferred_element_type=jnp.float32)
         + bv_ref[...]).astype(jnp.bfloat16)                          # (Cv, tn)
    vp_ref[0] += lax.dot_general(v, pb, (((1,), (1,)), ((), ())),
                                 preferred_element_type=jnp.float32)  # (Cv, S8)


def _attn_kernel(x_ref, kp_ref, wvp_ref, wkb_ref, bkb_ref, wo2_ref, bo_ref,
                 fused_ref, osum_ref, osq_ref, *, n_pool):
    # Pass 3: attention + pre-folded conv chain; also accumulates output GN stats.
    @pl.when(pl.program_id(1) == 0)
    def _():
        osum_ref[...] = jnp.zeros_like(osum_ref)
        osq_ref[...] = jnp.zeros_like(osq_ref)

    xb = x_ref[0]                                                    # (C, tn) bf16

    kq = jnp.dot(wkb_ref[0], xb,
                 preferred_element_type=jnp.float32) + bkb_ref[0]    # key GN folded
    kq = jnp.maximum(kq, 0.0).astype(jnp.bfloat16)                   # (Ck, tn)

    # sim: (Spad, tn); the 1/sqrt(Ck) scale was folded into kp in the wrapper.
    sim = lax.dot_general(kp_ref[0], kq, (((0,), (0,)), ((), ())),
                          preferred_element_type=jnp.float32)
    # In-kernel mask for the padded pooled rows (row >= S): no extra streamed input.
    row = lax.broadcasted_iota(jnp.int32, (sim.shape[0], 1), 0)
    sim = jnp.where(row < n_pool, sim, -1e30)

    m = jnp.max(sim, axis=0, keepdims=True)                          # (1, tn)
    p = jnp.exp(sim - m)                                             # padded rows -> 0
    denom = jnp.sum(p, axis=0, keepdims=True)                        # (1, tn) f32

    # Unnormalized context through the pre-folded (wo1 @ ww) @ vp weights; softmax
    # normalization applied afterwards as a (Cout, tn) * (1, tn) exact scale.
    ctx = jnp.dot(wvp_ref[0], p.astype(jnp.bfloat16),
                  preferred_element_type=jnp.float32)                # (Cout, tn)
    fused = (ctx * (1.0 / denom)
             + jnp.dot(wo2_ref[...], xb, preferred_element_type=jnp.float32)
             + bo_ref[...])                                          # (Cout, tn) f32

    fused_ref[0] = fused.astype(fused_ref.dtype)                     # bf16 writeback
    osum_ref[0] += jnp.sum(fused, axis=1, keepdims=True)
    osq_ref[0] += jnp.sum(fused * fused, axis=1, keepdims=True)


def _finalize_kernel(f_ref, osc_ref, osh_ref, o_ref):
    # Pass 4: output GroupNorm affine + ReLU (lane-dense stores along N).
    # TODO(synk): Dropout3d(p) is treated as identity (eval-mode semantics).
    f = f_ref[0].astype(jnp.float32)
    o_ref[0] = jnp.maximum(f * osc_ref[0] + osh_ref[0], 0.0).astype(o_ref.dtype)


# ----------------------------------------------------------------------------
# Wrapper
# ----------------------------------------------------------------------------
def _pick_tile(n, tile_n):
    cap = max(128, (min(int(tile_n), n) // 128) * 128)
    for tn in range(cap, 0, -128):
        if n % tn == 0:
            return tn
    # TODO(synk): support ragged N (masked last tile) instead of requiring N % 128 == 0.
    raise ValueError("spatial volume H*W*D must be a multiple of 128")


def apnb_pallas(x, params, psp_sizes, groups=4, tile_n=2048):
    B, C, H, W, D = x.shape
    Ck = params["wk"].shape[0]
    Cv = params["wv"].shape[0]
    Cout = params["ww"].shape[0]
    assert Cout == C, "APNB requires out_channels == in_channels (concat -> 2*C conv)"
    N = H * W * D
    tn = _pick_tile(N, tile_n)
    Nt = N // tn

    # --- pooling matrix: keep only the S real rows, padded to a multiple of 8 ------
    P_np = adaptive_pool_matrix(H, W, D, psp_sizes)                  # (S, N)
    S = P_np.shape[0]
    S8 = ((S + 7) // 8) * 8                                          # sublane-aligned
    Spad = max(((S + 127) // 128) * 128, 128)                        # lane-dense pooled axis
    P8 = np.zeros((S8, N), np.float32)
    P8[:S] = P_np
    P_bf = jnp.asarray(P8, jnp.bfloat16)

    # --- bf16 matmul operands, f32 biases / affine params ---------------------------
    bf = jnp.bfloat16
    f32 = jnp.float32
    x_bf = x.reshape(B, C, N).astype(bf)                             # no HBM transpose
    wk_f = params["wk"].astype(f32)                                  # (Ck, C)
    bk_f = params["bk"].reshape(Ck, 1).astype(f32)
    wv = params["wv"].astype(bf)                                     # (Cv, C)
    bv = params["bv"].reshape(Cv, 1).astype(f32)
    ww_f = params["ww"].astype(f32)                                  # (Cout, Cv)
    bw_f = params["bw"].reshape(Cout, 1).astype(f32)
    wo1_f = params["wo"][:, :Cout].astype(f32)                       # (Cout, Cout)
    wo2 = params["wo"][:, Cout:].astype(bf)                          # (Cout, C)
    bo_f = params["bo"].reshape(Cout, 1).astype(f32)

    cp_red = pltpu.CompilerParams(
        dimension_semantics=("parallel", "arbitrary"),
        vmem_limit_bytes=48 * 1024 * 1024)
    cp_par = pltpu.CompilerParams(
        dimension_semantics=("parallel", "parallel"),
        vmem_limit_bytes=48 * 1024 * 1024)

    def cspec(shape):                     # constant (weight-like) operand
        zeros = (0,) * len(shape)
        return pl.BlockSpec(tuple(shape), lambda b, j: zeros)

    def bspec(shape):                     # per-batch operand / resident accumulator
        zeros = (0,) * len(shape)
        return pl.BlockSpec((1,) + tuple(shape), lambda b, j: (b,) + zeros)

    x_spec = pl.BlockSpec((1, C, tn), lambda b, j: (b, 0, j))
    p_spec = pl.BlockSpec((S8, tn), lambda b, j: (0, j))
    fused_spec = pl.BlockSpec((1, Cout, tn), lambda b, j: (b, 0, j))

    def gn_affine(ssum, ssq, gamma, beta, cc):
        # tiny per-group reduction in XLA (cheap); returns per-channel scale/shift
        cg = cc // groups
        n_per_group = float(N * cg)
        gsum = ssum.reshape(B, groups, cg).sum(axis=2)
        gsq = ssq.reshape(B, groups, cg).sum(axis=2)
        mean = gsum / n_per_group
        var = jnp.maximum(gsq / n_per_group - mean * mean, 0.0)
        inv = lax.rsqrt(var + _EPS)                                  # (B, G)
        inv_c = jnp.repeat(inv, cg, axis=1)                          # (B, cc)
        mean_c = jnp.repeat(mean, cg, axis=1)
        scale = gamma[None, :] * inv_c
        shift = beta[None, :] - mean_c * scale
        return (scale[..., None].astype(f32), shift[..., None].astype(f32))

    # ---------------- pass 1: key-conv GroupNorm statistics -------------------------
    ksum, ksq = pl.pallas_call(
        _key_stats_kernel,
        out_shape=(jax.ShapeDtypeStruct((B, Ck, 1), f32),
                   jax.ShapeDtypeStruct((B, Ck, 1), f32)),
        grid_spec=pltpu.PrefetchScalarGridSpec(
            num_scalar_prefetch=0, grid=(B, Nt),
            in_specs=[x_spec, cspec((Ck, C)), cspec((Ck, 1))],
            out_specs=(bspec((Ck, 1)), bspec((Ck, 1)))),
        compiler_params=cp_red,
    )(x_bf, wk_f.astype(bf), bk_f)

    kscale, kshift = gn_affine(ksum, ksq, params["gn_k_w"], params["gn_k_b"], Ck)
    # fold the key GroupNorm affine into per-batch key weights / bias
    wk_b = (kscale * wk_f[None, :, :]).astype(bf)                    # (B, Ck, C)
    bk_b = (kscale * bk_f[None, :, :] + kshift).astype(f32)          # (B, Ck, 1)

    # ---------------- pass 2: pooled key kp + pooled value vp (P streamed once) -----
    kp, vp = pl.pallas_call(
        _pool_kernel,
        out_shape=(jax.ShapeDtypeStruct((B, Ck, S8), f32),
                   jax.ShapeDtypeStruct((B, Cv, S8), f32)),
        grid_spec=pltpu.PrefetchScalarGridSpec(
            num_scalar_prefetch=0, grid=(B, Nt),
            in_specs=[x_spec, p_spec,
                      bspec((Ck, C)), bspec((Ck, 1)),
                      cspec((Cv, C)), cspec((Cv, 1))],
            out_specs=(bspec((Ck, S8)), bspec((Cv, S8)))),
        compiler_params=cp_red,
    )(x_bf, P_bf, wk_b, bk_b, wv, bv)

    # wrapper-side pre-folds (tiny, XLA):
    #   kp_bf  = (1/sqrt(Ck)) * kp, zero-padded to the lane-dense Spad axis
    #   wvp_bf = (wo1 @ ww) @ vp    (collapses W conv + concat-conv context branch)
    #   bo_p   = bo + wo1 @ bw
    pad_s = Spad - S8
    kp_bf = jnp.pad(kp * (float(Ck) ** -0.5),
                    ((0, 0), (0, 0), (0, pad_s))).astype(bf)         # (B, Ck, Spad)
    wow = wo1_f @ ww_f                                               # (Cout, Cv)
    wvp = jnp.einsum('oc,bcs->bos', wow, vp)                         # (B, Cout, S8)
    wvp_bf = jnp.pad(wvp, ((0, 0), (0, 0), (0, pad_s))).astype(bf)   # (B, Cout, Spad)
    bo_p = (bo_f + wo1_f @ bw_f).astype(f32)                         # (Cout, 1)

    # ---------------- pass 3: attention + folded convs + output GN stats ------------
    flops = 2 * B * N * (C * Ck + Ck * Spad + Spad * Cout + C * Cout)
    cost = pl.CostEstimate(
        flops=int(flops),
        transcendentals=int(B * N * Spad),
        bytes_accessed=int(B * C * N * 2 + B * Cout * N * 2
                           + B * (Ck + Cout) * Spad * 2))

    fused, osum, osq = pl.pallas_call(
        functools.partial(_attn_kernel, n_pool=S),
        out_shape=(jax.ShapeDtypeStruct((B, Cout, N), bf),           # bf16 intermediate
                   jax.ShapeDtypeStruct((B, Cout, 1), f32),
                   jax.ShapeDtypeStruct((B, Cout, 1), f32)),
        grid_spec=pltpu.PrefetchScalarGridSpec(
            num_scalar_prefetch=0, grid=(B, Nt),
            in_specs=[x_spec,
                      bspec((Ck, Spad)), bspec((Cout, Spad)),
                      bspec((Ck, C)), bspec((Ck, 1)),
                      cspec((Cout, C)), cspec((Cout, 1))],
            out_specs=(fused_spec, bspec((Cout, 1)), bspec((Cout, 1)))),
        compiler_params=cp_red,
        cost_estimate=cost,
    )(x_bf, kp_bf, wvp_bf, wk_b, bk_b, wo2, bo_p)

    oscale, oshift = gn_affine(osum, osq, params["gn_o_w"], params["gn_o_b"], Cout)

    # ---------------- pass 4: final GroupNorm + ReLU --------------------------------
    out = pl.pallas_call(
        _finalize_kernel,
        out_shape=jax.ShapeDtypeStruct((B, Cout, N), f32),
        grid_spec=pltpu.PrefetchScalarGridSpec(
            num_scalar_prefetch=0, grid=(B, Nt),
            in_specs=[fused_spec, bspec((Cout, 1)), bspec((Cout, 1))],
            out_specs=fused_spec),
        compiler_params=cp_par,
    )(fused, oscale, oshift)

    return out.reshape(B, Cout, H, W, D)        # free reshape, no transpose


# ----------------------------------------------------------------------------
# Pure-JAX reference (same mixed-precision flavor, full arrays) for a sanity check
# ----------------------------------------------------------------------------
def apnb_reference(x, params, psp_sizes, groups=4):
    B, C, H, W, D = x.shape
    Ck = params["wk"].shape[0]
    Cout = params["ww"].shape[0]
    N = H * W * D
    P = jnp.asarray(adaptive_pool_matrix(H, W, D, psp_sizes))       # (S, N)
    xf = x.reshape(B, C, N)

    def mm(a, b):  # bf16 operands, f32 accumulation (mirrors the kernel)
        return jnp.matmul(a.astype(jnp.bfloat16).astype(jnp.float32),
                          b.astype(jnp.bfloat16).astype(jnp.float32))

    def gn_relu(h, gamma, beta):                                    # h: (B, Cc, N)
        b, cc, n = h.shape
        hg = h.reshape(b, groups, cc // groups, n)
        mean = hg.mean(axis=(2, 3), keepdims=True)
        var = ((hg - mean) ** 2).mean(axis=(2, 3), keepdims=True)
        hn = ((hg - mean) / jnp.sqrt(var + _EPS)).reshape(b, cc, n)
        return jnp.maximum(hn * gamma[None, :, None] + beta[None, :, None], 0.0)

    kq = gn_relu(mm(params["wk"], xf) + params["bk"][None, :, None],
                 params["gn_k_w"], params["gn_k_b"])                # (B, Ck, N)
    v = mm(params["wv"], xf) + params["bv"][None, :, None]          # (B, Cv, N)
    kp = mm(kq, P.T)                                                # (B, Ck, S)
    vp = mm(v, P.T)                                                 # (B, Cv, S)
    kps = kp * (float(Ck) ** -0.5)
    sim = mm(jnp.swapaxes(kq, 1, 2), kps)                           # (B, N, S)
    att = jax.nn.softmax(sim, axis=-1)
    ctx = mm(vp, jnp.swapaxes(att, 1, 2))                           # (B, Cv, N)
    wctx = mm(params["ww"], ctx) + params["bw"][None, :, None]      # (B, Cout, N)
    fused = (mm(params["wo"][:, :Cout], wctx)
             + mm(params["wo"][:, Cout:], xf)
             + params["bo"][None, :, None])
    out = gn_relu(fused, params["gn_o_w"], params["gn_o_b"])
    return out.reshape(B, Cout, H, W, D)


# ----------------------------------------------------------------------------
# Deterministic parameter init (shapes from the PyTorch __init__)
# ----------------------------------------------------------------------------
def init_params(key, C, Ck, Cv, Cout):
    ks = jax.random.split(key, 12)
    f32 = jnp.float32
    return dict(
        wk=0.2 * jax.random.normal(ks[0], (Ck, C), f32),
        bk=0.1 * jax.random.normal(ks[1], (Ck,), f32),
        gn_k_w=1.0 + 0.1 * jax.random.normal(ks[2], (Ck,), f32),
        gn_k_b=0.1 * jax.random.normal(ks[3], (Ck,), f32),
        wv=0.2 * jax.random.normal(ks[4], (Cv, C), f32),
        bv=0.1 * jax.random.normal(ks[5], (Cv,), f32),
        # PyTorch sets W to 0; use nonzero deterministic values to exercise the path.
        ww=0.2 * jax.random.normal(ks[6], (Cout, Cv), f32),
        bw=0.1 * jax.random.normal(ks[7], (Cout,), f32),
        wo=0.2 * jax.random.normal(ks[8], (Cout, 2 * C), f32),
        bo=0.1 * jax.random.normal(ks[9], (Cout,), f32),
        gn_o_w=1.0 + 0.1 * jax.random.normal(ks[10], (Cout,), f32),
        gn_o_b=0.1 * jax.random.normal(ks[11], (Cout,), f32),
    )


if __name__ == "__main__":
    # in_channels = out_channels = 16; key/value channels = 8; N = 8^3 = 512 voxels
    B, C, H, W, D = 2, 16, 8, 8, 8
    Ck, Cv, Cout = 8, 8, 16
    psp_sizes = (1, 2, 4)               # S = 1 + 8 + 64 = 73 -> S8 = 80, Spad = 128

    root = jax.random.PRNGKey(0)
    k_params, k_x = jax.random.split(root)
    params = init_params(k_params, C, Ck, Cv, Cout)
    x = jax.random.normal(k_x, (B, C, H, W, D), jnp.float32)

    # tile_n=128 so the small test shape exercises the multi-tile (N-tiled) path.
    out = apnb_pallas(x, params, psp_sizes, tile_n=128)
    out = jax.block_until_ready(out)
    assert out.shape == (B, Cout, H, W, D)

    ref = apnb_reference(x, params, psp_sizes)
    np.testing.assert_allclose(np.asarray(out), np.asarray(ref),
                               rtol=2e-2, atol=3e-2)
    print("KERNEL_OK")
</pallas_src>

<mosaic_0001>
module attributes {stable_mosaic.version = 11 : i64} {
  func.func @_key_stats_kernel(%arg0: i32, %arg1: i32, %arg2: memref<1x16x128xbf16, #tpu.memory_space<vmem>>, %arg3: memref<8x16xbf16, #tpu.memory_space<vmem>>, %arg4: memref<8x1xf32, #tpu.memory_space<vmem>>, %arg5: memref<1x8x1xf32, #tpu.memory_space<vmem>>, %arg6: memref<1x8x1xf32, #tpu.memory_space<vmem>>) attributes {dimension_semantics = [#tpu.dimension_semantics<parallel>, #tpu.dimension_semantics<arbitrary>], iteration_bounds = array<i64: 2, 4>, scalar_prefetch = 0 : i64, scratch_operands = 0 : i64, tpu.core_type = #tpu.core_type<tc>, window_params = [{transform_indices = @transform_0, window_bounds = array<i64: 1, 16, 128>}, {pipeline_mode = #tpu.pipeline_mode<synchronous>, transform_indices = @transform_1, window_bounds = array<i64: 8, 16>}, {pipeline_mode = #tpu.pipeline_mode<synchronous>, transform_indices = @transform_2, window_bounds = array<i64: 8, 1>}, {transform_indices = @transform_3, window_bounds = array<i64: 1, 8, 1>}, {transform_indices = @transform_4, window_bounds = array<i64: 1, 8, 1>}]} {
    %c0_i32 = arith.constant 0 : i32
    %0 = arith.cmpi eq, %arg1, %c0_i32 : i32
    %1 = arith.extui %0 : i1 to i32
    %c0_i32_0 = arith.constant 0 : i32
    %2 = arith.cmpi ne, %1, %c0_i32_0 : i32
    scf.if %2 {
      %cst_21 = arith.constant 0.000000e+00 : f32
      %27 = vector.broadcast %cst_21 : f32 to vector<1x8x1xf32>
      %c0_22 = arith.constant 0 : index
      %c0_23 = arith.constant 0 : index
      %c0_24 = arith.constant 0 : index
      %28 = vector.load %arg5[%c0_22, %c0_23, %c0_24] : memref<1x8x1xf32, #tpu.memory_space<vmem>>, vector<1x8x1xf32>
      tpu.vector_store %arg5[%c0_22, %c0_23, %c0_24], %27 {strides = array<i32>} : memref<1x8x1xf32, #tpu.memory_space<vmem>>, vector<1x8x1xf32>,
      %cst_25 = arith.constant 0.000000e+00 : f32
      %29 = vector.broadcast %cst_25 : f32 to vector<1x8x1xf32>
      %c0_26 = arith.constant 0 : index
      %c0_27 = arith.constant 0 : index
      %c0_28 = arith.constant 0 : index
      %30 = vector.load %arg6[%c0_26, %c0_27, %c0_28] : memref<1x8x1xf32, #tpu.memory_space<vmem>>, vector<1x8x1xf32>
      tpu.vector_store %arg6[%c0_26, %c0_27, %c0_28], %29 {strides = array<i32>} : memref<1x8x1xf32, #tpu.memory_space<vmem>>, vector<1x8x1xf32>,
    } else {
    }
    %c0 = arith.constant 0 : index
    %c0_1 = arith.constant 0 : index
    %c0_2 = arith.constant 0 : index
    %3 = vector.load %arg2[%c0, %c0_1, %c0_2] : memref<1x16x128xbf16, #tpu.memory_space<vmem>>, vector<1x16x128xbf16>
    %4 = vector.shape_cast %3 : vector<1x16x128xbf16> to vector<16x128xbf16>
    %c0_3 = arith.constant 0 : index
    %c0_4 = arith.constant 0 : index
    %5 = vector.load %arg3[%c0_3, %c0_4] : memref<8x16xbf16, #tpu.memory_space<vmem>>, vector<8x16xbf16>
    %cst = arith.constant dense<0.000000e+00> : vector<8x128xf32>
    %6 = tpu.matmul %5, %4, %cst {dimension_numbers = #tpu.dot_dimension_numbers<[1], [0], [0], [1], [0, 0, 1, 1], [], []>} : vector<8x16xbf16>, vector<16x128xbf16>, vector<8x128xf32> -> vector<8x128xf32>
    %c0_5 = arith.constant 0 : index
    %c0_6 = arith.constant 0 : index
    %7 = vector.load %arg4[%c0_5, %c0_6] : memref<8x1xf32, #tpu.memory_space<vmem>>, vector<8x1xf32>
    %8 = vector.broadcast %7 : vector<8x1xf32> to vector<8x128xf32>
    %9 = arith.addf %6, %8 : vector<8x128xf32>
    %c0_7 = arith.constant 0 : index
    %c0_8 = arith.constant 0 : index
    %c0_9 = arith.constant 0 : index
    %10 = vector.load %arg5[%c0_7, %c0_8, %c0_9] : memref<1x8x1xf32, #tpu.memory_space<vmem>>, vector<1x8x1xf32>
    %11 = vector.shape_cast %10 : vector<1x8x1xf32> to vector<8x1xf32>
    %cst_10 = arith.constant dense<0.000000e+00> : vector<8xf32>
    %12 = vector.multi_reduction <add>, %9, %cst_10 [1] : vector<8x128xf32> to vector<8xf32>
    %13 = vector.shape_cast %12 : vector<8xf32> to vector<8x1xf32>
    %14 = arith.addf %11, %13 : vector<8x1xf32>
    %c0_11 = arith.constant 0 : index
    %c0_12 = arith.constant 0 : index
    %c0_13 = arith.constant 0 : index
    %15 = vector.load %arg5[%c0_11, %c0_12, %c0_13] : memref<1x8x1xf32, #tpu.memory_space<vmem>>, vector<1x8x1xf32>
    %16 = vector.shape_cast %15 : vector<1x8x1xf32> to vector<8x1xf32>
    %17 = vector.shape_cast %14 : vector<8x1xf32> to vector<1x8x1xf32>
    tpu.vector_store %arg5[%c0_11, %c0_12, %c0_13], %17 {strides = array<i32>} : memref<1x8x1xf32, #tpu.memory_space<vmem>>, vector<1x8x1xf32>,
    %c0_14 = arith.constant 0 : index
    %c0_15 = arith.constant 0 : index
    %c0_16 = arith.constant 0 : index
    %18 = vector.load %arg6[%c0_14, %c0_15, %c0_16] : memref<1x8x1xf32, #tpu.memory_space<vmem>>, vector<1x8x1xf32>
    %19 = vector.shape_cast %18 : vector<1x8x1xf32> to vector<8x1xf32>
    %20 = arith.mulf %9, %9 : vector<8x128xf32>
    %cst_17 = arith.constant dense<0.000000e+00> : vector<8xf32>
    %21 = vector.multi_reduction <add>, %20, %cst_17 [1] : vector<8x128xf32> to vector<8xf32>
    %22 = vector.shape_cast %21 : vector<8xf32> to vector<8x1xf32>
    %23 = arith.addf %19, %22 : vector<8x1xf32>
    %c0_18 = arith.constant 0 : index
    %c0_19 = arith.constant 0 : index
    %c0_20 = arith.constant 0 : index
    %24 = vector.load %arg6[%c0_18, %c0_19, %c0_20] : memref<1x8x1xf32, #tpu.memory_space<vmem>>, vector<1x8x1xf32>
    %25 = vector.shape_cast %24 : vector<1x8x1xf32> to vector<8x1xf32>
    %26 = vector.shape_cast %23 : vector<8x1xf32> to vector<1x8x1xf32>
    tpu.vector_store %arg6[%c0_18, %c0_19, %c0_20], %26 {strides = array<i32>} : memref<1x8x1xf32, #tpu.memory_space<vmem>>, vector<1x8x1xf32>,
    return
  }
  func.func @transform_0(%arg0: i32, %arg1: i32) -> (i32, i32, i32) {
    %c0_i32 = arith.constant 0 : i32
    %c0_i32_0 = arith.constant 0 : i32
    return %arg0, %c0_i32, %arg1 : i32, i32, i32
  }
  func.func @transform_1(%arg0: i32, %arg1: i32) -> (i32, i32) {
    %c0_i32 = arith.constant 0 : i32
    %c0_i32_0 = arith.constant 0 : i32
    %c0_i32_1 = arith.constant 0 : i32
    return %c0_i32, %c0_i32_0 : i32, i32
  }
  func.func @transform_2(%arg0: i32, %arg1: i32) -> (i32, i32) {
    %c0_i32 = arith.constant 0 : i32
    %c0_i32_0 = arith.constant 0 : i32
    %c0_i32_1 = arith.constant 0 : i32
    return %c0_i32, %c0_i32_0 : i32, i32
  }
  func.func @transform_3(%arg0: i32, %arg1: i32) -> (i32, i32, i32) {
    %c0_i32 = arith.constant 0 : i32
    %c0_i32_0 = arith.constant 0 : i32
    %c0_i32_1 = arith.constant 0 : i32
    return %arg0, %c0_i32, %c0_i32_0 : i32, i32, i32
  }
  func.func @transform_4(%arg0: i32, %arg1: i32) -> (i32, i32, i32) {
    %c0_i32 = arith.constant 0 : i32
    %c0_i32_0 = arith.constant 0 : i32
    %c0_i32_1 = arith.constant 0 : i32
    return %arg0, %c0_i32, %c0_i32_0 : i32, i32, i32
  }
}

</mosaic_0001>

<bundles_post_ra>
// kernel: tpu_custom_call.1
= control target key start
LH: loop header
LB: loop body
LE: loop exit
PB: predicated region body
PF: predicated region fallthrough
CT: control target
= control target key end

     0   :  { %10 = vsyncpa [#allocation3], 0  ;;  %s836_s0 = inlined_call_operand.hbm [shape: bf16[2,16,512], index: 0, kind: input, shape index: {}]   ;;  %s837_s1 = inlined_call_operand.vmem [shape: bf16[8,16], index: 1, kind: input, shape index: {}]   ;;  %s838_s2 = inlined_call_operand.vmem [shape: f32[8,1], index: 2, kind: input, shape index: {}]   ;;  %s839_s3 = inlined_call_operand.vmem [shape: f32[2,8,1], index: 3, kind: output, shape index: {0}]   ;;  %s840_s4 = inlined_call_operand.vmem [shape: f32[2,8,1], index: 4, kind: output, shape index: {1}]  }
   0x1   :  { %12 = vsyncpa [#allocation3 + $0x1], 0  ;;  %s665_s15 = smov 0   ;;  %s667_s16 = smov 0  }
   0x2   :  { %s669_s17 = smov 0   ;;  %s671_s18 = smov 0  }
   0x3   :  { %s673_s19 = smov 0   ;;  %s675_s20 = smov 0  }
   0x4   :  { %s677_s21 = smov 0   ;;  %s679_s22 = smov 0  }
   0x5 LB: > { %s430_s23 = sadd.s32 4294967295, %s630_s22   ;;  %s27_s24 = sadd.s32 1, %s622_s20  ;;  %s630_s22 = sphi %s679_s22, %s18_s22   ;;  %s626_s21 = sphi %s677_s21, %s851_s21   ;;  %s622_s20 = sphi %s675_s20, %s850_s20   ;;  %s618_s19 = sphi %s673_s19, %s849_s19   ;;  %s614_s18 = sphi %s671_s18, %s848_s18   ;;  %s610_s17 = sphi %s669_s17, %s847_s17   ;;  %s606_s16 = sphi %s667_s16, %s846_s16   ;;  %s602_s15 = sphi %s665_s15, %s845_s15  }
   0x6   : > { %p28_p0 = scmp.ge.s32.totalorder %s27_s24, 4  ;;  %s30_s25 = sadd.s32 1, %s626_s21 }
   0x7   : > { %s39_s26 = sadd.s32 1, %s610_s17  ;;  %p46_p1 = scmp.ne.s32.totalorder %s610_s17, %s606_s16 }
   0x8   : > { %s853_s24 = smov (%p28_p0, %s27_s24), 0  ;;  %s855_s25 = smov (!%p28_p0, %s30_s25), %s626_s21 }
   0x9   : > { %s35_s27 = ssub.s32 %s622_s20, %s853_s24  ;;  %p47_p2 = scmp.eq.s32.totalorder %s630_s22, 0 }
   0xa   : > { %p32_p3 = scmp.ge.s32.totalorder %s855_s25, 2  ;;  %p52_p4 = scmp.ne.s32.totalorder %s606_s16, %s602_s15 }
   0xb   : > { %p716_p5 = por %p47_p2, %p46_p1  ;;  %p53_p6 = scmp.eq.s32.totalorder %s430_s23, 0 }
   0xc   : > { %s857_s25 = smov (%p32_p3, %s855_s25), 0  ;;  %p460_p8 = scmp.lt.s32.totalorder %s630_s22, 8 }
   0xd   : > { %p722_p7 = por %p53_p6, %p52_p4  ;;  %s34_s30 = ssub.s32 %s626_s21, %s857_s25 }
   0xe   : > { %s36_s5 = sor.u32 %s35_s27, %s34_s30  ;;  %s176_s6 = sand.u32 1, %s610_s17  }
   0xf   : > { %p37_p9 = scmp.eq.s32.totalorder %s36_s5, 0  ;;  %s434_s7 = sshll.u32 %s176_s6, 3 }
  0x10   : > { %s435_s8 = sshll.u32 %s626_s21, 3  ;;  %s180_s12 = scalar_lea.vmem [#allocation2], %s434_s7 }
  0x11   : > { %s732_s9 = scalar_select %p37_p9, %s610_s17, %s39_s26  }
  0x12   : > { %s185_s10 = sadd.s32 %s622_s20, %s435_s8  ;;  %s188_s13 = sshll.u32 %s180_s12, 4  ;;  %s740_s13 = int_to_ptr.vmem [resolvable:$true] %s188_s13 }
  0x13   : > { %s436_s11 = sshll.u32 %s185_s10, 6  ;;  %p746_p10 = pnand %p460_p8, %p716_p5 }
  0x14   : > { %s738_s23 = scalar_lea.hbm %s836_s0, %s436_s11  ;;  %s751_s27 = scalar_lea.sflag [#allocation3], %s176_s6 }
  0x15   : > { %s534_s30 = scalar_lea.hbm %s738_s23, 128  ;;  %p536_p13 = pneg %p746_p10 }
  0x16   : > { %p535_p12 = scmp.ne.s32.totalorder %s738_s23, %s534_s30  ;;  %s539_s7 = scalar_lea.hbm %s836_s0, 1024 }
  0x17   : > { %p540_p2 = scmp.lt.u32.totalorder %s738_s23, %s836_s0  ;;  %p541_p3 = scmp.lt.u32.totalorder %s539_s7, %s534_s30 }
  0x18   : > { %p537_p0 = pnand %p536_p13, %p535_p12  ;;  %p543_p5 = scmp.lt.u32.totalorder %s534_s30, %s738_s23 }
  0x19   : > { %p542_p4 = por %p541_p3, %p540_p2 }
  0x1a   : > { %p538_p1 = pneg %p537_p0 }
  0x1b   : > { %p544_p6 = por %p543_p5, %p542_p4 }
  0x1d   : > { %p545_p8 = pnand %p544_p6, %p538_p1 }
  0x1f   : > { %548 = shalt.err (!%p545_p8)
}
  0x20   : > { %s549_s6 = scalar_lea.vmem %s740_s13, 128  ;;  %s632_s11 = smov [#allocation2]  }
  0x21   : > { %p550_p9 = scmp.ne.s32.totalorder %s740_s13, %s549_s6  ;;  %s554_s12 = sshll.u32 %s632_s11, 4  ;;  %s555_s12 = int_to_ptr.vmem [resolvable:$false] %s554_s12 }
  0x22   : > { %s556_s14 = scalar_lea.vmem %s555_s12, 256  ;;  %p557_p11 = scmp.lt.s32.totalorder %s740_s13, %s555_s12 }
  0x23   : > { %p552_p12 = pnand %p550_p9, %p536_p13  ;;  %p558_p2 = scmp.lt.s32.totalorder %s556_s14, %s549_s6 }
  0x25   : > { %p553_p0 = pneg %p552_p12  ;;  %p559_p3 = por %p558_p2, %p557_p11 }
  0x27   : > { %p560_p4 = pnand %p559_p3, %p553_p0 }
  0x29   : > { %563 = shalt.err (!%p560_p4)
}
  0x2a   : > { %s633_s15 = smov 256   ;;  %s634_s30 = smov 64  }
  0x2b   : > { %s635_s5 = smov 4   ;;  %p196_p13 = scmp.lt.s32.totalorder %s630_s22, 9 }
  0x2c   : > { %459 = dma.hbm_to_vmem [thread:$0]  (!%p746_p10), %s738_s23, 128, %s740_s13, %s751_s27, %s633_s15, %s634_s30, %s635_s5  }
  0x2d   : > { %p844_p1 = scmp.ge.s32.totalorder %s630_s22, 1 }
  0x2f   : > { %p197_p5 = pnand %p844_p1, %p196_p13 }
  0x30   : > { %s202_s28 = sand.u32 (!%p197_p5), 1, %s606_s16  }
  0x31   : > { %200 = sbr.rel (%p197_p5) target bundleno = 432 (0x1b0), region = 32  ;;  %s438_s7 = sshll.u32 (!%p197_p5), %s202_s28, 3 }
  0x32   : > { %s203_s8 = scalar_lea.sflag (!%p197_p5), [#allocation3], %s202_s28  ;;  %s206_s10 = scalar_lea.vmem (!%p197_p5), [#allocation2], %s438_s7 }
  0x38   : > { %597 = dma.done.wait (%p722_p7), %s203_s8, 128  }
  0x39   : > { %599 = vsyncadd (%p722_p7), %s203_s8, 4294967168  ;;  %p234_p11 = scmp.lt.s32.totalorder %s618_s19, 1  ;;  %p441_p10 = scmp.ne.s32.totalorder %s614_s18, 0 }
  0x3a   : > { %vm247_vm0 = vcmask (!%p441_p10), 7168   ;;  %v636_v0 = vmov (!%p441_p10), 0.0  }
  0x3b   : > { %s859_s19 = smov (!%p234_p11, %s618_s19), 1  ;;  %246 = sbr.rel (%p441_p10) target bundleno = 66 (0x42), region = 40 }
  0x3c   : > { %s439_s13 = sshll.u32 %s859_s19, 3 }
  0x3d   : > { %s792_s27 = scalar_lea.vmem %s839_s3, %s439_s13  ;;  %s797_s12 = scalar_lea.vmem %s840_s4, %s439_s13 }
  0x3e   : > { %248 = vst.msk [vmem:[%s792_s27] sm:$0xff] (!%p441_p10), %vm247_vm0, %v636_v0  ;;  %249 = vst.msk [vmem:[%s797_s12] sm:$0xff] (!%p441_p10), %vm247_vm0, %v636_v0 }
  0x42 PF: > { %v533_v1 = vld [vmem:[%s206_s10] sm:$0xff]   ;;  %v637_v2 = vmov 0.0   ;;  %vm638_vm1 = vmmov 0   ;;  %vm265_vm2 = vcmask 130048   ;;  %v639_v5 = vmov 0  }
  0x43   : > { %448 = vmatprep.subr.bf16.mxu0 %v637_v2  ;;  %v253_v3 = vld [vmem:[%s838_s2] sm:$0xff]  ;;  %450 = vmatprep.mubr.msk.bf16.mxu0 %vm638_vm1, %v637_v2  ;;  %vm313_vm3 = vcmask 7168  }
  0x44   : > { %449 = vmatpush3.bf16.msra.mxu0 %v533_v1  ;;  %v252_v4 = vld [vmem:[%s837_s1] sm:$0xf]  ;;  %532 = vset.pattern.permute.xlu0 %v639_v5 }
  0x45   : > { %256 = vperm.xlu0 %532, %v253_v3   ;;  %v309_v13 = vld [vmem:[%s792_s27] sm:$0xff] }
  0x46   : > { %v315_v15 = vld [vmem:[%s797_s12] sm:$0xff] }
  0x47   : > { %451 = vmatmul.mubr.msk.bf16.vlgmr.msra.gmra.mrb[0].mxu0 %vm265_vm2, %v252_v4 }
  0xc4   : > { %v257_v6 = vpop.permute.xlu0 %256 }
 0x11a   : > { %v303_v7 = vpop.f32.mrb[0].mxu0 }
 0x11b   : > { %v304_v8 = vadd.f32 %v303_v7, %v257_v6  ;;  %v452_v9 = vpop.f32.mrb[1].mxu0 }
 0x11c   : > { %v306_v10 = vpop.f32.mrb[2].mxu0 }
 0x11d   : > { %310 = vadd.xlane.f32.xlu0 %v304_v8  ;;  %v453_v11 = vpop.f32.mrb[3].mxu0  ;;  %v316_v12 = vmul.f32 %v304_v8, %v304_v8 }
 0x11f   : > { %317 = vadd.xlane.f32.xlu1 %v316_v12 }
 0x1aa   : > { %v311_v14 = vpop.xlane.xlu0 %310 }
 0x1ab   : > { %v312_v16 = vadd.f32 %v311_v14, %v309_v13 }
 0x1ac   : > { %v318_v17 = vpop.xlane.xlu1 %317 }
 0x1ad   : > { %314 = vst.msk [vmem:[%s792_s27] sm:$0xff] %vm313_vm3, %v312_v16  ;;  %v319_v18 = vadd.f32 %v318_v17, %v315_v15 }
 0x1af   : > { %320 = vst.msk [vmem:[%s797_s12] sm:$0xff] %vm313_vm3, %v319_v18 }
 0x1b0 PF: > { %s18_s22 = sadd.s32 1, %s630_s22   ;;  %s845_s15 = smov %s606_s16 }
 0x1b1   : > { %p15_p7 = scmp.ge.s32.totalorder %s18_s22, 10   ;;  %s846_s16 = smov %s610_s17 }
 0x1b2   : > { %s847_s17 = smov %s732_s9  ;;  %s848_s18 = smov %s622_s20 }
 0x1b3   : > { %s849_s19 = smov %s626_s21  ;;  %s850_s20 = smov %s853_s24 }
 0x1b4   : > { %s851_s21 = smov %s857_s25  ;;  %17 = sbr.rel (!%p15_p7) target bundleno = 5 (0x5), region = 88 }
 0x1bb   :  { %354 = vsyncpa [#allocation3], 1 }
 0x1bc   :  { %356 = vsyncpa [#allocation3 + $0x1], 1 }

</bundles_post_ra>
